<compile_context>
chip_gen: v7x
topology: tpu7x:2x2x1
jax: 0.10.0
libtpu: 0.0.40
codegen_flags: <defaults>
</compile_context>

<pallas_src>
import functools

import jax
import jax.numpy as jnp
from jax.experimental import pallas as pl
from jax.experimental.pallas import tpu as pltpu


SEGMENT_LEN = 10


# ----------------------------------------------------------------------------
# Fused kernel: conv (k=1) + grams + norms + log_softmax + symmetric CE
# ----------------------------------------------------------------------------
def _clip_fused_kernel(*refs, segment_level):
    if segment_level:
        (x1_ref, x2_ref, w1_ref, b1_ref, w2_ref, b2_ref,
         same_t_ref, r_nb_ref, r_bn_ref,
         probs_ref, loss_ref) = refs
    else:
        (x1_ref, x2_ref, w1_ref, b1_ref, w2_ref, b2_ref,
         same_t_ref, r_nb_ref, r_bn_ref,
         same_l_ref, q_nm_ref, q_mn_ref,
         probs_ref, loss_ref) = refs

    f32 = jnp.float32
    contract_last = (((1,), (1,)), ((), ()))   # A[i,k] B[j,k] -> [i, j]
    matmul = (((1,), (0,)), ((), ()))          # A[i,k] B[k,j] -> [i, j]

    # ---- pointwise Conv1d (kernel_size=1):  E = X @ W^T + b  ----------------
    e1 = jax.lax.dot_general(x1_ref[...], w1_ref[...], contract_last,
                             preferred_element_type=f32) + b1_ref[...]   # [N,C]
    e2 = jax.lax.dot_general(x2_ref[...], w2_ref[...], contract_last,
                             preferred_element_type=f32) + b2_ref[...]   # [N,C]

    # ---- per-sample gram and squared norms ----------------------------------
    k_full = jax.lax.dot_general(e1, e2, contract_last,
                                 preferred_element_type=f32)             # [N,N]
    e1_sq = jnp.sum(e1 * e1, axis=-1, keepdims=True)                     # [N,1]
    e2_sq = jnp.sum(e2 * e2, axis=-1, keepdims=True)                     # [N,1]

    def lsm_rows(z):
        m = jnp.max(z, axis=-1, keepdims=True)
        return z - m - jnp.log(jnp.sum(jnp.exp(z - m), axis=-1, keepdims=True))

    def lsm_cols(z):
        m = jnp.max(z, axis=0, keepdims=True)
        return z - m - jnp.log(jnp.sum(jnp.exp(z - m), axis=0, keepdims=True))

    def eye(n):
        return (jax.lax.broadcasted_iota(jnp.int32, (n, n), 0)
                == jax.lax.broadcasted_iota(jnp.int32, (n, n), 1)).astype(f32)

    def sym_double_lsm_ce(logits):
        # probs = log_softmax(logits, -1); PyTorch then feeds probs (and its
        # transpose) to F.cross_entropy, which applies log_softmax AGAIN.
        # Row-wise re-application is idempotent -> ce_row uses probs directly;
        # the column-wise one is NOT redundant and is kept.
        n = logits.shape[0]
        ident = eye(n)
        p = lsm_rows(logits)
        ce_row = -jnp.sum(p * ident) / n
        ce_col = -jnp.sum(lsm_cols(p) * ident) / n
        return p, 0.5 * (ce_row + ce_col)

    # ---- segment (batch) level loss -----------------------------------------
    # G_seg[b,d] = sum_{c,t} E1[b,c,t] E2[d,c,t] = R_bn @ (K * sameT) @ R_nb
    kt = k_full * same_t_ref[...]
    g_seg = jax.lax.dot_general(
        r_bn_ref[...],
        jax.lax.dot_general(kt, r_nb_ref[...], matmul, preferred_element_type=f32),
        matmul, preferred_element_type=f32)                              # [B,B]
    # ||x1_embed[b]||^2 as a [1, B] row so it scales the 'd' (column) axis,
    # matching torch.einsum('bct,dct,d->bd', ..., inv_norms).
    a1_sq = jnp.sum(e1_sq * r_nb_ref[...], axis=0, keepdims=True)        # [1,B]
    inv_norms = pl.reciprocal(1e-8 + jnp.sqrt(a1_sq), approx=True)
    seg_logits = g_seg * inv_norms
    seg_probs, seg_loss = sym_double_lsm_ce(seg_logits)
    probs_ref[...] = seg_probs

    if segment_level:
        total = seg_loss
    else:
        # Time-level: same embeddings, aggregated per length-10 segment.
        kl = k_full * same_l_ref[...]
        g_time = jax.lax.dot_general(
            q_mn_ref[...],
            jax.lax.dot_general(kl, q_nm_ref[...], matmul,
                                preferred_element_type=f32),
            matmul, preferred_element_type=f32)                          # [M,M]
        n1_sq = jax.lax.dot_general(q_mn_ref[...], e1_sq, matmul,
                                    preferred_element_type=f32)          # [M,1]
        n2_sq = jnp.sum(e2_sq * q_nm_ref[...], axis=0, keepdims=True)    # [1,M]
        inv1 = pl.reciprocal(jnp.sqrt(n1_sq) + 1e-8, approx=True)        # rows
        inv2 = pl.reciprocal(jnp.sqrt(n2_sq) + 1e-8, approx=True)        # cols
        time_logits = g_time * inv1 * inv2
        _, time_loss = sym_double_lsm_ce(time_logits)
        total = time_loss + 0.1 * seg_loss

    loss_ref[0, 0] = total


def _full_spec(shape):
    return pl.BlockSpec(shape, lambda i: (0,) * len(shape))


# ----------------------------------------------------------------------------
# Metrics (eval glue; PyTorch uses .cpu().item() -> host ints)
# ----------------------------------------------------------------------------
def eval_metrics(probs):
    bsz = probs.shape[0]
    targets = jnp.arange(bsz)
    _, idx10 = jax.lax.top_k(probs, min(10, bsz))
    top10_correct = jnp.sum(idx10 == targets[:, None])
    _, idx5 = jax.lax.top_k(probs, min(5, bsz))
    top5_correct = jnp.sum(idx5 == targets[:, None])
    correct = jnp.sum(jnp.argmax(probs, axis=-1) == targets)
    return {
        "correct": correct,
        "top_10_correct": top10_correct,
        "top_5_correct": top5_correct,
    }


# ----------------------------------------------------------------------------
# Full CLIPLoss forward (single fused pallas_call)
# ----------------------------------------------------------------------------
@functools.partial(jax.jit, static_argnames=("segment_level", "mel"))
def clip_loss_forward(x_1, x_2, w1, b1, w2, b2, segment_level=False, mel=False):
    assert x_1.shape == x_2.shape
    B, C, T = x_1.shape
    N = B * T
    f32 = jnp.float32

    if mel and not segment_level:
        # TODO(synk): mel=True drops segments via a data-dependent boolean mask
        # (dynamic shapes); no static Pallas equivalent -- not implemented.
        raise NotImplementedError("mel=True is not supported")

    # [B, C, T] -> [B*T, C] rows (one row per (b, t) sample). This is the only
    # layout prep outside the kernel; everything downstream stays in VMEM.
    x1_rows = jnp.transpose(x_1, (0, 2, 1)).reshape(N, C).astype(f32)
    x2_rows = jnp.transpose(x_2, (0, 2, 1)).reshape(N, C).astype(f32)

    # Structural 0/1 constants (pure functions of static shapes -> XLA
    # constant-folds them; a few KiB). They let the kernel perform every
    # aggregation as a plain 2-D matmul / masked reduce (no reshapes).
    n_idx = jnp.arange(N)
    same_t = (n_idx[:, None] % T == n_idx[None, :] % T).astype(f32)        # [N,N]
    r_nb = (n_idx[:, None] // T == jnp.arange(B)[None, :]).astype(f32)     # [N,B]
    r_bn = r_nb.T                                                          # [B,N]

    inputs = [
        x1_rows, x2_rows,
        w1.astype(f32), b1.reshape(1, C).astype(f32),
        w2.astype(f32), b2.reshape(1, C).astype(f32),
        same_t, r_nb, r_bn,
    ]

    if not segment_level:
        assert T % SEGMENT_LEN == 0, "T must be divisible by segment_len=10"
        M = N // SEGMENT_LEN
        same_l = (n_idx[:, None] % SEGMENT_LEN
                  == n_idx[None, :] % SEGMENT_LEN).astype(f32)             # [N,N]
        q_nm = (n_idx[:, None] // SEGMENT_LEN
                == jnp.arange(M)[None, :]).astype(f32)                     # [N,M]
        q_mn = q_nm.T                                                      # [M,N]
        inputs += [same_l, q_nm, q_mn]

    kernel = functools.partial(_clip_fused_kernel, segment_level=segment_level)

    probs, loss = pl.pallas_call(
        kernel,
        out_shape=(
            jax.ShapeDtypeStruct((B, B), f32),   # segment-level log-probs
            jax.ShapeDtypeStruct((1, 1), f32),   # scalar loss (SMEM)
        ),
        grid=(1,),
        in_specs=[_full_spec(a.shape) for a in inputs],
        out_specs=(
            pl.BlockSpec((B, B), lambda i: (0, 0)),
            pl.BlockSpec(memory_space=pltpu.SMEM),
        ),
    )(*inputs)

    return {"loss": loss[0, 0], "metrics": eval_metrics(probs)}


# ----------------------------------------------------------------------------
# Main
# ----------------------------------------------------------------------------
if __name__ == "__main__":
    B, C, T = 2, 32, 20  # dim = 32, T divisible by segment_len=10

    key = jax.random.PRNGKey(0)
    k_x1, k_x2, k_w1, k_b1, k_w2, k_b2 = jax.random.split(key, 6)

    x_1 = jax.random.normal(k_x1, (B, C, T), dtype=jnp.float32)
    x_2 = jax.random.normal(k_x2, (B, C, T), dtype=jnp.float32)

    # Conv1d(dim, dim, kernel_size=1): weight [dim, dim, 1] -> stored as [dim, dim].
    # Deterministic init mimicking torch's uniform(-1/sqrt(fan_in), 1/sqrt(fan_in)).
    bound = 1.0 / (C ** 0.5)
    w1 = jax.random.uniform(k_w1, (C, C), jnp.float32, -bound, bound)
    b1 = jax.random.uniform(k_b1, (C,), jnp.float32, -bound, bound)
    w2 = jax.random.uniform(k_w2, (C, C), jnp.float32, -bound, bound)
    b2 = jax.random.uniform(k_b2, (C,), jnp.float32, -bound, bound)
    # temperature = 1.0  # nn.Parameter in the module, unused in forward

    out = clip_loss_forward(x_1, x_2, w1, b1, w2, b2, segment_level=False, mel=False)
    jax.block_until_ready(out["loss"])
    print("KERNEL_OK")
</pallas_src>

<mosaic_0001>
module attributes {stable_mosaic.version = 11 : i64} {
  func.func @_clip_fused_kernel(%arg0: i32, %arg1: memref<40x32xf32, #tpu.memory_space<vmem>>, %arg2: memref<40x32xf32, #tpu.memory_space<vmem>>, %arg3: memref<32x32xf32, #tpu.memory_space<vmem>>, %arg4: memref<1x32xf32, #tpu.memory_space<vmem>>, %arg5: memref<32x32xf32, #tpu.memory_space<vmem>>, %arg6: memref<1x32xf32, #tpu.memory_space<vmem>>, %arg7: memref<40x40xf32, #tpu.memory_space<vmem>>, %arg8: memref<40x2xf32, #tpu.memory_space<vmem>>, %arg9: memref<2x40xf32, #tpu.memory_space<vmem>>, %arg10: memref<40x40xf32, #tpu.memory_space<vmem>>, %arg11: memref<40x4xf32, #tpu.memory_space<vmem>>, %arg12: memref<4x40xf32, #tpu.memory_space<vmem>>, %arg13: memref<2x2xf32, #tpu.memory_space<vmem>>, %arg14: memref<1x1xf32, #tpu.memory_space<smem>>) attributes {dimension_semantics = [#tpu.dimension_semantics<arbitrary>], iteration_bounds = array<i64: 1>, scalar_prefetch = 0 : i64, scratch_operands = 0 : i64, tpu.core_type = #tpu.core_type<tc>, window_params = [{pipeline_mode = #tpu.pipeline_mode<synchronous>, transform_indices = @transform_0, window_bounds = array<i64: 40, 32>}, {pipeline_mode = #tpu.pipeline_mode<synchronous>, transform_indices = @transform_1, window_bounds = array<i64: 40, 32>}, {pipeline_mode = #tpu.pipeline_mode<synchronous>, transform_indices = @transform_2, window_bounds = array<i64: 32, 32>}, {pipeline_mode = #tpu.pipeline_mode<synchronous>, transform_indices = @transform_3, window_bounds = array<i64: 1, 32>}, {pipeline_mode = #tpu.pipeline_mode<synchronous>, transform_indices = @transform_4, window_bounds = array<i64: 32, 32>}, {pipeline_mode = #tpu.pipeline_mode<synchronous>, transform_indices = @transform_5, window_bounds = array<i64: 1, 32>}, {pipeline_mode = #tpu.pipeline_mode<synchronous>, transform_indices = @transform_6, window_bounds = array<i64: 40, 40>}, {pipeline_mode = #tpu.pipeline_mode<synchronous>, transform_indices = @transform_7, window_bounds = array<i64: 40, 2>}, {pipeline_mode = #tpu.pipeline_mode<synchronous>, transform_indices = @transform_8, window_bounds = array<i64: 2, 40>}, {pipeline_mode = #tpu.pipeline_mode<synchronous>, transform_indices = @transform_9, window_bounds = array<i64: 40, 40>}, {pipeline_mode = #tpu.pipeline_mode<synchronous>, transform_indices = @transform_10, window_bounds = array<i64: 40, 4>}, {pipeline_mode = #tpu.pipeline_mode<synchronous>, transform_indices = @transform_11, window_bounds = array<i64: 4, 40>}, {pipeline_mode = #tpu.pipeline_mode<synchronous>, transform_indices = @transform_12, window_bounds = array<i64: 2, 2>}, {transform_indices = @transform_13, window_bounds = array<i64: 1, 1>}]} {
    %c0 = arith.constant 0 : index
    %c0_0 = arith.constant 0 : index
    %0 = vector.load %arg1[%c0, %c0_0] : memref<40x32xf32, #tpu.memory_space<vmem>>, vector<40x32xf32>
    %c0_1 = arith.constant 0 : index
    %c0_2 = arith.constant 0 : index
    %1 = vector.load %arg3[%c0_1, %c0_2] : memref<32x32xf32, #tpu.memory_space<vmem>>, vector<32x32xf32>
    %cst = arith.constant dense<0.000000e+00> : vector<40x32xf32>
    %2 = tpu.matmul %0, %1, %cst {dimension_numbers = #tpu.dot_dimension_numbers<[1], [1], [0], [0], [0, 0, 1, 0], [], []>} : vector<40x32xf32>, vector<32x32xf32>, vector<40x32xf32> -> vector<40x32xf32>
    %c0_3 = arith.constant 0 : index
    %c0_4 = arith.constant 0 : index
    %3 = vector.load %arg4[%c0_3, %c0_4] : memref<1x32xf32, #tpu.memory_space<vmem>>, vector<1x32xf32>
    %4 = vector.broadcast %3 : vector<1x32xf32> to vector<40x32xf32>
    %5 = arith.addf %2, %4 : vector<40x32xf32>
    %c0_5 = arith.constant 0 : index
    %c0_6 = arith.constant 0 : index
    %6 = vector.load %arg2[%c0_5, %c0_6] : memref<40x32xf32, #tpu.memory_space<vmem>>, vector<40x32xf32>
    %c0_7 = arith.constant 0 : index
    %c0_8 = arith.constant 0 : index
    %7 = vector.load %arg5[%c0_7, %c0_8] : memref<32x32xf32, #tpu.memory_space<vmem>>, vector<32x32xf32>
    %cst_9 = arith.constant dense<0.000000e+00> : vector<40x32xf32>
    %8 = tpu.matmul %6, %7, %cst_9 {dimension_numbers = #tpu.dot_dimension_numbers<[1], [1], [0], [0], [0, 0, 1, 0], [], []>} : vector<40x32xf32>, vector<32x32xf32>, vector<40x32xf32> -> vector<40x32xf32>
    %c0_10 = arith.constant 0 : index
    %c0_11 = arith.constant 0 : index
    %9 = vector.load %arg6[%c0_10, %c0_11] : memref<1x32xf32, #tpu.memory_space<vmem>>, vector<1x32xf32>
    %10 = vector.broadcast %9 : vector<1x32xf32> to vector<40x32xf32>
    %11 = arith.addf %8, %10 : vector<40x32xf32>
    %cst_12 = arith.constant dense<0.000000e+00> : vector<40x40xf32>
    %12 = tpu.matmul %5, %11, %cst_12 {dimension_numbers = #tpu.dot_dimension_numbers<[1], [1], [0], [0], [0, 0, 1, 0], [], []>} : vector<40x32xf32>, vector<40x32xf32>, vector<40x40xf32> -> vector<40x40xf32>
    %13 = arith.mulf %5, %5 : vector<40x32xf32>
    %cst_13 = arith.constant dense<0.000000e+00> : vector<40xf32>
    %14 = vector.multi_reduction <add>, %13, %cst_13 [1] : vector<40x32xf32> to vector<40xf32>
    %15 = vector.shape_cast %14 : vector<40xf32> to vector<40x1xf32>
    %16 = arith.mulf %11, %11 : vector<40x32xf32>
    %cst_14 = arith.constant dense<0.000000e+00> : vector<40xf32>
    %17 = vector.multi_reduction <add>, %16, %cst_14 [1] : vector<40x32xf32> to vector<40xf32>
    %18 = vector.shape_cast %17 : vector<40xf32> to vector<40x1xf32>
    %c0_15 = arith.constant 0 : index
    %c0_16 = arith.constant 0 : index
    %19 = vector.load %arg7[%c0_15, %c0_16] : memref<40x40xf32, #tpu.memory_space<vmem>>, vector<40x40xf32>
    %20 = arith.mulf %12, %19 : vector<40x40xf32>
    %c0_17 = arith.constant 0 : index
    %c0_18 = arith.constant 0 : index
    %21 = vector.load %arg9[%c0_17, %c0_18] : memref<2x40xf32, #tpu.memory_space<vmem>>, vector<2x40xf32>
    %c0_19 = arith.constant 0 : index
    %c0_20 = arith.constant 0 : index
    %22 = vector.load %arg8[%c0_19, %c0_20] : memref<40x2xf32, #tpu.memory_space<vmem>>, vector<40x2xf32>
    %cst_21 = arith.constant dense<0.000000e+00> : vector<40x2xf32>
    %23 = tpu.matmul %20, %22, %cst_21 {dimension_numbers = #tpu.dot_dimension_numbers<[1], [0], [0], [1], [0, 0, 1, 1], [], []>} : vector<40x40xf32>, vector<40x2xf32>, vector<40x2xf32> -> vector<40x2xf32>
    %cst_22 = arith.constant dense<0.000000e+00> : vector<2x2xf32>
    %24 = tpu.matmul %21, %23, %cst_22 {dimension_numbers = #tpu.dot_dimension_numbers<[1], [0], [0], [1], [0, 0, 1, 1], [], []>} : vector<2x40xf32>, vector<40x2xf32>, vector<2x2xf32> -> vector<2x2xf32>
    %c0_23 = arith.constant 0 : index
    %c0_24 = arith.constant 0 : index
    %25 = vector.load %arg8[%c0_23, %c0_24] : memref<40x2xf32, #tpu.memory_space<vmem>>, vector<40x2xf32>
    %26 = vector.broadcast %15 : vector<40x1xf32> to vector<40x2xf32>
    %27 = arith.mulf %26, %25 : vector<40x2xf32>
    %cst_25 = arith.constant dense<0.000000e+00> : vector<2xf32>
    %28 = vector.multi_reduction <add>, %27, %cst_25 [0] : vector<40x2xf32> to vector<2xf32>
    %29 = vector.shape_cast %28 : vector<2xf32> to vector<1x2xf32>
    %30 = math.sqrt %29 : vector<1x2xf32>
    %cst_26 = arith.constant 9.99999993E-9 : f32
    %31 = vector.broadcast %cst_26 : f32 to vector<1x2xf32>
    %32 = arith.addf %31, %30 : vector<1x2xf32>
    %33 = tpu.reciprocal %32 {approx = true} : vector<1x2xf32> -> vector<1x2xf32>
    %34 = vector.broadcast %33 : vector<1x2xf32> to vector<2x2xf32>
    %35 = arith.mulf %24, %34 : vector<2x2xf32>
    %36 = tpu.iota {dimensions = array<i32: 0>} : vector<2x2xi32>
    %37 = tpu.iota {dimensions = array<i32: 1>} : vector<2x2xi32>
    %38 = arith.cmpi eq, %36, %37 : vector<2x2xi32>
    %39 = arith.extui %38 : vector<2x2xi1> to vector<2x2xi32>
    %40 = arith.sitofp %39 : vector<2x2xi32> to vector<2x2xf32>
    %cst_27 = arith.constant dense<0xFF800000> : vector<2xf32>
    %41 = vector.multi_reduction <maximumf>, %35, %cst_27 [1] : vector<2x2xf32> to vector<2xf32>
    %42 = vector.shape_cast %41 : vector<2xf32> to vector<2x1xf32>
    %43 = vector.broadcast %42 : vector<2x1xf32> to vector<2x2xf32>
    %44 = arith.subf %35, %43 : vector<2x2xf32>
    %45 = vector.broadcast %42 : vector<2x1xf32> to vector<2x2xf32>
    %46 = arith.subf %35, %45 : vector<2x2xf32>
    %47 = math.exp %46 : vector<2x2xf32>
    %cst_28 = arith.constant dense<0.000000e+00> : vector<2xf32>
    %48 = vector.multi_reduction <add>, %47, %cst_28 [1] : vector<2x2xf32> to vector<2xf32>
    %49 = vector.shape_cast %48 : vector<2xf32> to vector<2x1xf32>
    %50 = math.log %49 : vector<2x1xf32>
    %51 = vector.broadcast %50 : vector<2x1xf32> to vector<2x2xf32>
    %52 = arith.subf %44, %51 : vector<2x2xf32>
    %53 = arith.mulf %52, %40 : vector<2x2xf32>
    %54 = vector.shape_cast %53 : vector<2x2xf32> to vector<1x2x2xf32>
    %cst_29 = arith.constant dense<0.000000e+00> : vector<1xf32>
    %55 = vector.multi_reduction <add>, %54, %cst_29 [1, 2] : vector<1x2x2xf32> to vector<1xf32>
    %56 = vector.shape_cast %55 : vector<1xf32> to vector<1x1x1xf32>
    %57 = vector.extract %56[0, 0, 0] : f32 from vector<1x1x1xf32>
    %cst_30 = arith.constant 0.000000e+00 : f32
    %58 = arith.subf %cst_30, %57 : f32
    %cst_31 = arith.constant 2.000000e+00 : f32
    %59 = arith.divf %58, %cst_31 : f32
    %cst_32 = arith.constant dense<0xFF800000> : vector<2xf32>
    %60 = vector.multi_reduction <maximumf>, %52, %cst_32 [0] : vector<2x2xf32> to vector<2xf32>
    %61 = vector.shape_cast %60 : vector<2xf32> to vector<1x2xf32>
    %62 = vector.broadcast %61 : vector<1x2xf32> to vector<2x2xf32>
    %63 = arith.subf %52, %62 : vector<2x2xf32>
    %64 = vector.broadcast %61 : vector<1x2xf32> to vector<2x2xf32>
    %65 = arith.subf %52, %64 : vector<2x2xf32>
    %66 = math.exp %65 : vector<2x2xf32>
    %cst_33 = arith.constant dense<0.000000e+00> : vector<2xf32>
    %67 = vector.multi_reduction <add>, %66, %cst_33 [0] : vector<2x2xf32> to vector<2xf32>
    %68 = vector.shape_cast %67 : vector<2xf32> to vector<1x2xf32>
    %69 = math.log %68 : vector<1x2xf32>
    %70 = vector.broadcast %69 : vector<1x2xf32> to vector<2x2xf32>
    %71 = arith.subf %63, %70 : vector<2x2xf32>
    %72 = arith.mulf %71, %40 : vector<2x2xf32>
    %73 = vector.shape_cast %72 : vector<2x2xf32> to vector<1x2x2xf32>
    %cst_34 = arith.constant dense<0.000000e+00> : vector<1xf32>
    %74 = vector.multi_reduction <add>, %73, %cst_34 [1, 2] : vector<1x2x2xf32> to vector<1xf32>
    %75 = vector.shape_cast %74 : vector<1xf32> to vector<1x1x1xf32>
    %76 = vector.extract %75[0, 0, 0] : f32 from vector<1x1x1xf32>
    %cst_35 = arith.constant 0.000000e+00 : f32
    %77 = arith.subf %cst_35, %76 : f32
    %cst_36 = arith.constant 2.000000e+00 : f32
    %78 = arith.divf %77, %cst_36 : f32
    %79 = arith.addf %59, %78 : f32
    %cst_37 = arith.constant 5.000000e-01 : f32
    %80 = arith.mulf %cst_37, %79 : f32
    %c0_38 = arith.constant 0 : index
    %c0_39 = arith.constant 0 : index
    %81 = vector.load %arg13[%c0_38, %c0_39] : memref<2x2xf32, #tpu.memory_space<vmem>>, vector<2x2xf32>
    tpu.vector_store %arg13[%c0_38, %c0_39], %52 {strides = array<i32>} : memref<2x2xf32, #tpu.memory_space<vmem>>, vector<2x2xf32>,
    %c0_40 = arith.constant 0 : index
    %c0_41 = arith.constant 0 : index
    %82 = vector.load %arg10[%c0_40, %c0_41] : memref<40x40xf32, #tpu.memory_space<vmem>>, vector<40x40xf32>
    %83 = arith.mulf %12, %82 : vector<40x40xf32>
    %c0_42 = arith.constant 0 : index
    %c0_43 = arith.constant 0 : index
    %84 = vector.load %arg12[%c0_42, %c0_43] : memref<4x40xf32, #tpu.memory_space<vmem>>, vector<4x40xf32>
    %c0_44 = arith.constant 0 : index
    %c0_45 = arith.constant 0 : index
    %85 = vector.load %arg11[%c0_44, %c0_45] : memref<40x4xf32, #tpu.memory_space<vmem>>, vector<40x4xf32>
    %cst_46 = arith.constant dense<0.000000e+00> : vector<40x4xf32>
    %86 = tpu.matmul %83, %85, %cst_46 {dimension_numbers = #tpu.dot_dimension_numbers<[1], [0], [0], [1], [0, 0, 1, 1], [], []>} : vector<40x40xf32>, vector<40x4xf32>, vector<40x4xf32> -> vector<40x4xf32>
    %cst_47 = arith.constant dense<0.000000e+00> : vector<4x4xf32>
    %87 = tpu.matmul %84, %86, %cst_47 {dimension_numbers = #tpu.dot_dimension_numbers<[1], [0], [0], [1], [0, 0, 1, 1], [], []>} : vector<4x40xf32>, vector<40x4xf32>, vector<4x4xf32> -> vector<4x4xf32>
    %c0_48 = arith.constant 0 : index
    %c0_49 = arith.constant 0 : index
    %88 = vector.load %arg12[%c0_48, %c0_49] : memref<4x40xf32, #tpu.memory_space<vmem>>, vector<4x40xf32>
    %cst_50 = arith.constant dense<0.000000e+00> : vector<4x1xf32>
    %89 = tpu.matmul %88, %15, %cst_50 {dimension_numbers = #tpu.dot_dimension_numbers<[1], [0], [0], [1], [0, 0, 1, 1], [], []>} : vector<4x40xf32>, vector<40x1xf32>, vector<4x1xf32> -> vector<4x1xf32>
    %c0_51 = arith.constant 0 : index
    %c0_52 = arith.constant 0 : index
    %90 = vector.load %arg11[%c0_51, %c0_52] : memref<40x4xf32, #tpu.memory_space<vmem>>, vector<40x4xf32>
    %91 = vector.broadcast %18 : vector<40x1xf32> to vector<40x4xf32>
    %92 = arith.mulf %91, %90 : vector<40x4xf32>
    %cst_53 = arith.constant dense<0.000000e+00> : vector<4xf32>
    %93 = vector.multi_reduction <add>, %92, %cst_53 [0] : vector<40x4xf32> to vector<4xf32>
    %94 = vector.shape_cast %93 : vector<4xf32> to vector<1x4xf32>
    %95 = math.sqrt %89 : vector<4x1xf32>
    %cst_54 = arith.constant 9.99999993E-9 : f32
    %96 = vector.broadcast %cst_54 : f32 to vector<4x1xf32>
    %97 = arith.addf %95, %96 : vector<4x1xf32>
    %98 = tpu.reciprocal %97 {approx = true} : vector<4x1xf32> -> vector<4x1xf32>
    %99 = math.sqrt %94 : vector<1x4xf32>
    %cst_55 = arith.constant 9.99999993E-9 : f32
    %100 = vector.broadcast %cst_55 : f32 to vector<1x4xf32>
    %101 = arith.addf %99, %100 : vector<1x4xf32>
    %102 = tpu.reciprocal %101 {approx = true} : vector<1x4xf32> -> vector<1x4xf32>
    %103 = vector.broadcast %98 : vector<4x1xf32> to vector<4x4xf32>
    %104 = arith.mulf %87, %103 : vector<4x4xf32>
    %105 = vector.broadcast %102 : vector<1x4xf32> to vector<4x4xf32>
    %106 = arith.mulf %104, %105 : vector<4x4xf32>
    %107 = tpu.iota {dimensions = array<i32: 0>} : vector<4x4xi32>
    %108 = tpu.iota {dimensions = array<i32: 1>} : vector<4x4xi32>
    %109 = arith.cmpi eq, %107, %108 : vector<4x4xi32>
    %110 = arith.extui %109 : vector<4x4xi1> to vector<4x4xi32>
    %111 = arith.sitofp %110 : vector<4x4xi32> to vector<4x4xf32>
    %cst_56 = arith.constant dense<0xFF800000> : vector<4xf32>
    %112 = vector.multi_reduction <maximumf>, %106, %cst_56 [1] : vector<4x4xf32> to vector<4xf32>
    %113 = vector.shape_cast %112 : vector<4xf32> to vector<4x1xf32>
    %114 = vector.broadcast %113 : vector<4x1xf32> to vector<4x4xf32>
    %115 = arith.subf %106, %114 : vector<4x4xf32>
    %116 = vector.broadcast %113 : vector<4x1xf32> to vector<4x4xf32>
    %117 = arith.subf %106, %116 : vector<4x4xf32>
    %118 = math.exp %117 : vector<4x4xf32>
    %cst_57 = arith.constant dense<0.000000e+00> : vector<4xf32>
    %119 = vector.multi_reduction <add>, %118, %cst_57 [1] : vector<4x4xf32> to vector<4xf32>
    %120 = vector.shape_cast %119 : vector<4xf32> to vector<4x1xf32>
    %121 = math.log %120 : vector<4x1xf32>
    %122 = vector.broadcast %121 : vector<4x1xf32> to vector<4x4xf32>
    %123 = arith.subf %115, %122 : vector<4x4xf32>
    %124 = arith.mulf %123, %111 : vector<4x4xf32>
    %125 = vector.shape_cast %124 : vector<4x4xf32> to vector<1x4x4xf32>
    %cst_58 = arith.constant dense<0.000000e+00> : vector<1xf32>
    %126 = vector.multi_reduction <add>, %125, %cst_58 [1, 2] : vector<1x4x4xf32> to vector<1xf32>
    %127 = vector.shape_cast %126 : vector<1xf32> to vector<1x1x1xf32>
    %128 = vector.extract %127[0, 0, 0] : f32 from vector<1x1x1xf32>
    %cst_59 = arith.constant 0.000000e+00 : f32
    %129 = arith.subf %cst_59, %128 : f32
    %cst_60 = arith.constant 4.000000e+00 : f32
    %130 = arith.divf %129, %cst_60 : f32
    %cst_61 = arith.constant dense<0xFF800000> : vector<4xf32>
    %131 = vector.multi_reduction <maximumf>, %123, %cst_61 [0] : vector<4x4xf32> to vector<4xf32>
    %132 = vector.shape_cast %131 : vector<4xf32> to vector<1x4xf32>
    %133 = vector.broadcast %132 : vector<1x4xf32> to vector<4x4xf32>
    %134 = arith.subf %123, %133 : vector<4x4xf32>
    %135 = vector.broadcast %132 : vector<1x4xf32> to vector<4x4xf32>
    %136 = arith.subf %123, %135 : vector<4x4xf32>
    %137 = math.exp %136 : vector<4x4xf32>
    %cst_62 = arith.constant dense<0.000000e+00> : vector<4xf32>
    %138 = vector.multi_reduction <add>, %137, %cst_62 [0] : vector<4x4xf32> to vector<4xf32>
    %139 = vector.shape_cast %138 : vector<4xf32> to vector<1x4xf32>
    %140 = math.log %139 : vector<1x4xf32>
    %141 = vector.broadcast %140 : vector<1x4xf32> to vector<4x4xf32>
    %142 = arith.subf %134, %141 : vector<4x4xf32>
    %143 = arith.mulf %142, %111 : vector<4x4xf32>
    %144 = vector.shape_cast %143 : vector<4x4xf32> to vector<1x4x4xf32>
    %cst_63 = arith.constant dense<0.000000e+00> : vector<1xf32>
    %145 = vector.multi_reduction <add>, %144, %cst_63 [1, 2] : vector<1x4x4xf32> to vector<1xf32>
    %146 = vector.shape_cast %145 : vector<1xf32> to vector<1x1x1xf32>
    %147 = vector.extract %146[0, 0, 0] : f32 from vector<1x1x1xf32>
    %cst_64 = arith.constant 0.000000e+00 : f32
    %148 = arith.subf %cst_64, %147 : f32
    %cst_65 = arith.constant 4.000000e+00 : f32
    %149 = arith.divf %148, %cst_65 : f32
    %150 = arith.addf %130, %149 : f32
    %cst_66 = arith.constant 5.000000e-01 : f32
    %151 = arith.mulf %cst_66, %150 : f32
    %cst_67 = arith.constant 1.000000e-01 : f32
    %152 = arith.mulf %cst_67, %80 : f32
    %153 = arith.addf %151, %152 : f32
    %c0_68 = arith.constant 0 : index
    %c0_69 = arith.constant 0 : index
    %154 = memref.load %arg14[%c0_68, %c0_69] : memref<1x1xf32, #tpu.memory_space<smem>>
    memref.store %153, %arg14[%c0_68, %c0_69] : memref<1x1xf32, #tpu.memory_space<smem>>
    return
  }
  func.func @transform_0(%arg0: i32) -> (i32, i32) {
    %c0_i32 = arith.constant 0 : i32
    %c0_i32_0 = arith.constant 0 : i32
    %c0_i32_1 = arith.constant 0 : i32
    return %c0_i32, %c0_i32_0 : i32, i32
  }
  func.func @transform_1(%arg0: i32) -> (i32, i32) {
    %c0_i32 = arith.constant 0 : i32
    %c0_i32_0 = arith.constant 0 : i32
    %c0_i32_1 = arith.constant 0 : i32
    return %c0_i32, %c0_i32_0 : i32, i32
  }
  func.func @transform_2(%arg0: i32) -> (i32, i32) {
    %c0_i32 = arith.constant 0 : i32
    %c0_i32_0 = arith.constant 0 : i32
    %c0_i32_1 = arith.constant 0 : i32
    return %c0_i32, %c0_i32_0 : i32, i32
  }
  func.func @transform_3(%arg0: i32) -> (i32, i32) {
    %c0_i32 = arith.constant 0 : i32
    %c0_i32_0 = arith.constant 0 : i32
    %c0_i32_1 = arith.constant 0 : i32
    return %c0_i32, %c0_i32_0 : i32, i32
  }
  func.func @transform_4(%arg0: i32) -> (i32, i32) {
    %c0_i32 = arith.constant 0 : i32
    %c0_i32_0 = arith.constant 0 : i32
    %c0_i32_1 = arith.constant 0 : i32
    return %c0_i32, %c0_i32_0 : i32, i32
  }
  func.func @transform_5(%arg0: i32) -> (i32, i32) {
    %c0_i32 = arith.constant 0 : i32
    %c0_i32_0 = arith.constant 0 : i32
    %c0_i32_1 = arith.constant 0 : i32
    return %c0_i32, %c0_i32_0 : i32, i32
  }
  func.func @transform_6(%arg0: i32) -> (i32, i32) {
    %c0_i32 = arith.constant 0 : i32
    %c0_i32_0 = arith.constant 0 : i32
    %c0_i32_1 = arith.constant 0 : i32
    return %c0_i32, %c0_i32_0 : i32, i32
  }
  func.func @transform_7(%arg0: i32) -> (i32, i32) {
    %c0_i32 = arith.constant 0 : i32
    %c0_i32_0 = arith.constant 0 : i32
    %c0_i32_1 = arith.constant 0 : i32
    return %c0_i32, %c0_i32_0 : i32, i32
  }
  func.func @transform_8(%arg0: i32) -> (i32, i32) {
    %c0_i32 = arith.constant 0 : i32
    %c0_i32_0 = arith.constant 0 : i32
    %c0_i32_1 = arith.constant 0 : i32
    return %c0_i32, %c0_i32_0 : i32, i32
  }
  func.func @transform_9(%arg0: i32) -> (i32, i32) {
    %c0_i32 = arith.constant 0 : i32
    %c0_i32_0 = arith.constant 0 : i32
    %c0_i32_1 = arith.constant 0 : i32
    return %c0_i32, %c0_i32_0 : i32, i32
  }
  func.func @transform_10(%arg0: i32) -> (i32, i32) {
    %c0_i32 = arith.constant 0 : i32
    %c0_i32_0 = arith.constant 0 : i32
    %c0_i32_1 = arith.constant 0 : i32
    return %c0_i32, %c0_i32_0 : i32, i32
  }
  func.func @transform_11(%arg0: i32) -> (i32, i32) {
    %c0_i32 = arith.constant 0 : i32
    %c0_i32_0 = arith.constant 0 : i32
    %c0_i32_1 = arith.constant 0 : i32
    return %c0_i32, %c0_i32_0 : i32, i32
  }
  func.func @transform_12(%arg0: i32) -> (i32, i32) {
    %c0_i32 = arith.constant 0 : i32
    %c0_i32_0 = arith.constant 0 : i32
    %c0_i32_1 = arith.constant 0 : i32
    return %c0_i32, %c0_i32_0 : i32, i32
  }
  func.func @transform_13(%arg0: i32) -> (i32, i32) {
    %c0_i32 = arith.constant 0 : i32
    %c0_i32_0 = arith.constant 0 : i32
    %c0_i32_1 = arith.constant 0 : i32
    return %c0_i32, %c0_i32_0 : i32, i32
  }
}

</mosaic_0001>

<bundles_post_ra>
// kernel: clip_loss_forward.1
= control target key start
LH: loop header
LB: loop body
LE: loop exit
PB: predicated region body
PF: predicated region fallthrough
CT: control target
= control target key end

     0   :  { %vm60_vm0 = vcmask 261120   ;;  %v1544_v3 = vmov 0.0|0.0   ;;  %vm1545_vm2 = vmmov 0   ;;  %v1546_v8 = vmov 0.0   ;;  %s1973_s0 = inlined_call_operand.vmem [shape: f32[40,32], index: 0, kind: input, shape index: {}]   ;;  %s1974_s1 = inlined_call_operand.vmem [shape: f32[40,32], index: 1, kind: input, shape index: {}]   ;;  %s1975_s2 = inlined_call_operand.vmem [shape: f32[32,32], index: 2, kind: input, shape index: {}]   ;;  %s1976_s3 = inlined_call_operand.vmem [shape: f32[1,32], index: 3, kind: input, shape index: {}]   ;;  %s1977_s4 = inlined_call_operand.vmem [shape: f32[32,32], index: 4, kind: input, shape index: {}]   ;;  %s1978_s5 = inlined_call_operand.vmem [shape: f32[1,32], index: 5, kind: input, shape index: {}]   ;;  %s1979_s6 = inlined_call_operand.vmem [shape: f32[40,40], index: 6, kind: input, shape index: {}]   ;;  %s1980_s7 = inlined_call_operand.vmem [shape: f32[40,2], index: 7, kind: input, shape index: {}]   ;;  %s1981_s8 = inlined_call_operand.vmem [shape: f32[2,40], index: 8, kind: input, shape index: {}]   ;;  %s1982_s9 = inlined_call_operand.vmem [shape: f32[40,40], index: 9, kind: input, shape index: {}]   ;;  %s1983_s10 = inlined_call_operand.vmem [shape: f32[40,4], index: 10, kind: input, shape index: {}]   ;;  %s1984_s11 = inlined_call_operand.vmem [shape: f32[4,40], index: 11, kind: input, shape index: {}]   ;;  %s1985_s12 = inlined_call_operand.vmem [shape: f32[2,2], index: 12, kind: output, shape index: {0}]   ;;  %s1986_s13 = inlined_call_operand.hbm [shape: f32[1,1], index: 13, kind: output, shape index: {1}]  }
   0x1   :  { %v49_v0 = vld [vmem:[%s1975_s2] sm:$0xff]  ;;  %v50_v1 = vld [vmem:[%s1975_s2 + $0x8] sm:$0xff]  ;;  %1436 = vmatprep.subr.bf16.mxu0 %v1544_v3  ;;  %1444 = vmatprep.subr.bf16.mxu1 %v1544_v3  ;;  %vm1632_vm1 = vmpackc.low %vm60_vm0, %vm60_vm0 }
   0x2   :  { %v183_v2 = vld [vmem:[%s1977_s4] sm:$0xff]  ;;  %v1437_v4 = vpack.c.bf16 %v50_v1, %v49_v0  ;;  %v184_v6 = vld [vmem:[%s1977_s4 + $0x8] sm:$0xff]  ;;  %1284 = vmatprep.mubr.msk.f32.mxu0 %vm1545_vm2, %v1546_v8  ;;  %1307 = vmatprep.mubr.msk.f32.mxu1 %vm1545_vm2, %v1546_v8  ;;  %v51_v9 = vld [vmem:[%s1975_s2 + $0x10] sm:$0xff] }
   0x3   :  { %v1445_v7 = vpack.c.bf16 %v184_v6, %v183_v2  ;;  %v52_v10 = vld [vmem:[%s1975_s2 + $0x18] sm:$0xff]  ;;  %v185_v11 = vld [vmem:[%s1977_s4 + $0x10] sm:$0xff] }
   0x4   :  { %1439 = vmatpush3.bf16.xpose.msk.msra.mxu0 %vm1632_vm1, %v1437_v4  ;;  %v186_v12 = vld [vmem:[%s1977_s4 + $0x18] sm:$0xff] }
   0x5   :  { %1447 = vmatpush3.bf16.xpose.msk.msra.mxu1 %vm1632_vm1, %v1445_v7  ;;  %1440 = vmatprep.subr.bf16.mxu0 %v1544_v3 }
   0x6   :  { %1448 = vmatprep.subr.bf16.mxu1 %v1544_v3 }
   0x7   :  { %19 = vsyncpa [#allocation3], 0  ;;  %v1441_v13 = vpack.c.bf16 %v52_v10, %v51_v9  ;;  %v1449_v14 = vpack.c.bf16 %v186_v12, %v185_v11  ;;  %v44_v15 = vld [vmem:[%s1973_s0] sm:$0xff]  ;;  %v45_v17 = vld [vmem:[%s1973_s0 + $0x8] sm:$0xff]  ;;  %vm671_vm3 = vcmask 15360   ;;  %vm487_vm4 = vcmask 326656  }
   0x8   :  { %v178_v16 = vld [vmem:[%s1974_s1] sm:$0xff]  ;;  %v179_v18 = vld [vmem:[%s1974_s1 + $0x8] sm:$0xff]  ;;  %v46_v19 = vld [vmem:[%s1973_s0 + $0x10] sm:$0xff]  ;;  %vm704_vm7 = vcmask 9216   ;;  %vm1039_vm10 = vcmask 31744   ;;  %vm1080_vm13 = vcmask 27648  }
   0x9   :  { %v180_v20 = vld [vmem:[%s1974_s1 + $0x10] sm:$0xff]  ;;  %v47_v21 = vld [vmem:[%s1973_s0 + $0x18] sm:$0xff]  ;;  %v48_v23 = vld [vmem:[%s1973_s0 + $0x20] sm:$0xff] }
   0xa   :  { %v181_v22 = vld [vmem:[%s1974_s1 + $0x18] sm:$0xff]  ;;  %v182_v24 = vld [vmem:[%s1974_s1 + $0x20] sm:$0xff] }
   0xb   :  { %v1166_v25 = vld [vmem:[%s1976_s3] ss:$0 sm:$0xff] }
   0xc   :  { %1443 = vmatpush3.bf16.xpose.msk.msra.mxu0 %vm1632_vm1, %v1441_v13  ;;  %v1176_v31 = vld [vmem:[%s1978_s5] ss:$0 sm:$0xff] }
   0xd   :  { %1451 = vmatpush3.bf16.xpose.msk.msra.mxu1 %vm1632_vm1, %v1449_v14  ;;  %1452 = vmatprep.subr.bf16.mxu0 %v1544_v3 }
   0xe   :  { %1460 = vmatprep.subr.bf16.mxu1 %v1544_v3 }
  0x13   :  { %1285 = vmatmul.mubr.msk.f32.vlgmr.msra.gmra.mrb[0].mxu0 %vm60_vm0, %v44_v15 }
  0x14   :  { %1308 = vmatmul.mubr.msk.f32.vlgmr.msra.gmra.mrb[0].mxu1 %vm60_vm0, %v178_v16  ;;  %1287 = vmatprep.mubr.msk.f32.mxu0 %vm1545_vm2, %v1546_v8 }
  0x15   :  { %1310 = vmatprep.mubr.msk.f32.mxu1 %vm1545_vm2, %v1546_v8 }
  0x17   :  { %1288 = vmatmul.mubr.msk.f32.gmra.mrb[2].mxu0 %vm60_vm0, %v45_v17  ;;  %v482_v17 = vld [vmem:[%s1980_s7] sm:$0xff] }
  0x18   :  { %1311 = vmatmul.mubr.msk.f32.gmra.mrb[2].mxu1 %vm60_vm0, %v179_v18  ;;  %1290 = vmatprep.mubr.msk.f32.mxu0 %vm1545_vm2, %v1546_v8  ;;  %v483_v18 = vld [vmem:[%s1980_s7 + $0x8] sm:$0xff] }
  0x19   :  { %1313 = vmatprep.mubr.msk.f32.mxu1 %vm1545_vm2, %v1546_v8 }
  0x1b   :  { %1291 = vmatmul.mubr.msk.f32.gmra.mrb[4].mxu0 %vm60_vm0, %v46_v19  ;;  %v1461_v19 = vpack.c.bf16 %v483_v18, %v482_v17 }
  0x1c   :  { %1314 = vmatmul.mubr.msk.f32.gmra.mrb[4].mxu1 %vm60_vm0, %v180_v20  ;;  %1293 = vmatprep.mubr.msk.f32.mxu0 %vm1545_vm2, %v1546_v8  ;;  %v484_v20 = vld [vmem:[%s1980_s7 + $0x10] sm:$0xff] }
  0x1d   :  { %1316 = vmatprep.mubr.msk.f32.mxu1 %vm1545_vm2, %v1546_v8  ;;  %1462 = vmatpush3.bf16.msra.mxu1 %v1461_v19 }
  0x1e   :  { %1463 = vmatprep.subr.bf16.mxu1 %v1544_v3 }
  0x1f   :  { %1294 = vmatmul.mubr.msk.f32.gmra.mrb[6].mxu0 %vm60_vm0, %v47_v21  ;;  %v485_v21 = vld [vmem:[%s1980_s7 + $0x18] sm:$0xff] }
  0x20   :  { %1317 = vmatmul.mubr.msk.f32.gmra.mrb[6].mxu1 %vm60_vm0, %v181_v22  ;;  %1296 = vmatprep.mubr.msk.f32.mxu0 %vm1545_vm2, %v1546_v8  ;;  %v1464_v22 = vpack.c.bf16 %v485_v21, %v484_v20 }
  0x21   :  { %1319 = vmatprep.mubr.msk.f32.mxu1 %vm1545_vm2, %v1546_v8 }
  0x22   :  { %1465 = vmatpush3.bf16.msra.mxu1 %v1464_v22 }
  0x23   :  { %1297 = vmatmul.mubr.msk.f32.gmra.mrb[8].mxu0 %vm60_vm0, %v48_v23  ;;  %1355 = vmatprep.subr.mxu1 %v1546_v8  ;;  %v1787_v23 = vld [vmem:[%s1980_s7 + $0x20] sm:$0xff]  ;;  %s1532_s7 = scalar_lea.hbm %s1986_s13, 16 }
  0x24   :  { %1320 = vmatmul.mubr.msk.f32.gmra.mrb[8].mxu1 %vm60_vm0, %v182_v24  ;;  %1332 = vmatprep.mubr.msk.f32.mxu0 %vm1545_vm2, %v1546_v8  ;;  %p1533_p0 = scmp.ne.s32.totalorder %s1986_s13, %s1532_s7  ;;  %p1536_p1 = scmp.lt.u32.totalorder %s1532_s7, %s1986_s13 }
  0x25   :  { %1357 = vmatprep.mubr.msk.f32.mxu1 %vm1545_vm2, %v1546_v8 }
  0x26   :  { %1356 = vmatpush3.msra.mxu1 %v1787_v23  ;;  %p1538_p2 = pnand %p1536_p1, %p1533_p0 }
  0x27   :  { %1472 = vmatprep.subr.bf16.mxu1 %v1544_v3 }
  0xe6   :  { %v154_v26 = vpop.f32.mrb[0].mxu0 }
  0xe7   :  { %v287_v27 = vpop.f32.mrb[0].mxu1  ;;  %v1730_v28 = vadd.f32 %v1166_v25, %v154_v26  ;;  %v1286_v29 = vpop.f32.mrb[1].mxu0 }
  0xe8   :  { %v1309_v30 = vpop.f32.mrb[1].mxu1  ;;  %v288_v38 = vadd.f32 %v1176_v31, %v287_v27 }
  0xe9   :  { %v431_v32 = vmul.f32 %v1730_v28, %v1730_v28 }
  0xea   :  { %v159_v33 = vpop.f32.mrb[2].mxu0  ;;  %v451_v0 = vmul.f32 %v288_v38, %v288_v38 }
  0xeb   :  { %v292_v34 = vpop.f32.mrb[2].mxu1  ;;  %v1737_v35 = vadd.f32 %v1166_v25, %v159_v33  ;;  %v1289_v36 = vpop.f32.mrb[3].mxu0  ;;  %v436_v37 = vsel %vm60_vm0, %v431_v32, 0.0 }
  0xec   :  { %v293_v39 = vadd.f32 %v1176_v31, %v292_v34  ;;  %v1312_v40 = vpop.f32.mrb[3].mxu1  ;;  %437 = vadd.xlane.f32.xlu0 %v436_v37  ;;  %v456_v7 = vsel %vm60_vm0, %v451_v0, 0.0 }
  0xed   :  { %v432_v41 = vmul.f32 %v1737_v35, %v1737_v35  ;;  %v1821_v40 = vld [vmem:[%s1983_s10] sm:$0xff] }
  0xee   :  { %v1453_v42 = vpack.c.bf16 %v293_v39, %v288_v38  ;;  %v164_v43 = vpop.f32.mrb[4].mxu0  ;;  %v452_v11 = vmul.f32 %v293_v39, %v293_v39  ;;  %v471_v39 = vld [vmem:[%s1979_s6] sm:$0xff] }
  0xef   :  { %v165_v44 = vadd.f32 %v1166_v25, %v164_v43  ;;  %v297_v45 = vpop.f32.mrb[4].mxu1  ;;  %v1292_v46 = vpop.f32.mrb[5].mxu0  ;;  %v439_v47 = vsel %vm60_vm0, %v432_v41, 0.0  ;;  %v1826_v41 = vld [vmem:[%s1983_s10 + $0x8] sm:$0xff] }
  0xf0   :  { %v1315_v48 = vpop.f32.mrb[5].mxu1  ;;  %1455 = vmatpush3.bf16.xpose.msk.msra.mxu0 %vm1632_vm1, %v1453_v42  ;;  %440 = vadd.xlane.f32.xlu0 %v439_v47  ;;  %v298_v55 = vadd.f32 %v1176_v31, %v297_v45  ;;  %v459_v5 = vsel %vm60_vm0, %v452_v11, 0.0  ;;  %v1473_v42 = vpack.c.bf16 %v1826_v41, %v1821_v40  ;;  %v472_v46 = vld [vmem:[%s1979_s6 + $0x8] sm:$0xff]  ;;  %v1836_v47 = vld [vmem:[%s1983_s10 + $0x10] sm:$0xff]  ;;  %v773_v11 = vld [vmem:[%s1982_s9 + $0x18] sm:$0xff] }
  0xf1   :  { %v433_v49 = vmul.f32 %v165_v44, %v165_v44  ;;  %1456 = vmatprep.subr.bf16.mxu0 %v1544_v3  ;;  %v1841_v48 = vld [vmem:[%s1983_s10 + $0x18] sm:$0xff] }
  0xf2   :  { %v169_v50 = vpop.f32.mrb[6].mxu0  ;;  %v453_v10 = vmul.f32 %v298_v55, %v298_v55 }
  0xf3   :  { %v302_v51 = vpop.f32.mrb[6].mxu1  ;;  %v170_v52 = vadd.f32 %v1166_v25, %v169_v50  ;;  %v442_v53 = vsel %vm60_vm0, %v433_v49, 0.0  ;;  %v1295_v54 = vpop.f32.mrb[7].mxu0  ;;  %v1476_v49 = vpack.c.bf16 %v1841_v48, %v1836_v47 }
  0xf4   :  { %v303_v56 = vadd.f32 %v1176_v31, %v302_v51  ;;  %v1318_v57 = vpop.f32.mrb[7].mxu1  ;;  %443 = vadd.xlane.f32.xlu1 %v442_v53  ;;  %v462_v12 = vsel %vm60_vm0, %v453_v10, 0.0  ;;  %v473_v53 = vld [vmem:[%s1979_s6 + $0x10] sm:$0xff] }
  0xf5   :  { %v434_v58 = vmul.f32 %v170_v52, %v170_v52  ;;  %v474_v57 = vld [vmem:[%s1979_s6 + $0x18] sm:$0xff] }
  0xf6   :  { %v1457_v59 = vpack.c.bf16 %v303_v56, %v298_v55  ;;  %v174_v60 = vpop.f32.mrb[8].mxu0  ;;  %v454_v14 = vmul.f32 %v303_v56, %v303_v56 }
  0xf7   :  { %v175_v61 = vadd.f32 %v1166_v25, %v174_v60  ;;  %v445_v62 = vsel %vm60_vm0, %v434_v58, 0.0  ;;  %v307_v63 = vpop.f32.mrb[8].mxu1  ;;  %v1298_v1 = vpop.f32.mrb[9].mxu0  ;;  %v1862_v58 = vld [vmem:[%s1983_s10 + $0x20] sm:$0xff] }
  0xf8   :  { %1459 = vmatpush3.bf16.xpose.msk.msra.mxu0 %vm1632_vm1, %v1457_v59  ;;  %446 = vadd.xlane.f32.xlu1 %v445_v62  ;;  %v1321_v2 = vpop.f32.mrb[9].mxu1  ;;  %v308_v6 = vadd.f32 %v1176_v31, %v307_v63  ;;  %v465_v16 = vsel %vm60_vm0, %v454_v14, 0.0  ;;  %v475_v62 = vld [vmem:[%s1979_s6 + $0x20] sm:$0xff] }
  0xf9   :  { %v435_v4 = vmul.f32 %v175_v61, %v175_v61  ;;  %1330 = vmatprep.subr.mxu0 %v1546_v8  ;;  %v770_v2 = vld [vmem:[%s1982_s9] sm:$0xff] }
  0xfa   :  { %v455_v13 = vmul.f32 %v308_v6, %v308_v6 }
  0xfb   :  { %v448_v9 = vsel %vm60_vm0, %v435_v4, 0.0 }
  0xfc   :  { %457 = vadd.xlane.f32.xlu1 %v456_v7  ;;  %449 = vadd.xlane.f32.xlu0 %v448_v9  ;;  %v468_v15 = vsel %vm60_vm0, %v455_v13, 0.0  ;;  %v772_v9 = vld [vmem:[%s1982_s9 + $0x10] sm:$0xff]  ;;  %v774_v13 = vld [vmem:[%s1982_s9 + $0x20] sm:$0xff] }
 0x100   :  { %1331 = vmatpush3.xpose.msk.msra.mxu0 %vm60_vm0, %v308_v6  ;;  %463 = vadd.xlane.f32.xlu1 %v462_v12  ;;  %v771_v6 = vld [vmem:[%s1982_s9 + $0x8] sm:$0xff] }
 0x101   :  { %460 = vadd.xlane.f32.xlu0 %v459_v5  ;;  %1466 = vmatprep.subr.bf16.mxu0 %v1544_v3 }
 0x103   :  { %1333 = vmatmul.mubr.msk.f32.vlgmr.msra.gmra.mrb[10].mxu0 %vm60_vm0, %v1730_v28 }
 0x104   :  { %469 = vadd.xlane.f32.xlu1 %v468_v15  ;;  %1335 = vmatprep.mubr.msk.f32.mxu0 %vm1545_vm2, %v1546_v8 }
 0x105   :  { %466 = vadd.xlane.f32.xlu0 %v465_v16 }
 0x107   :  { %1336 = vmatmul.mubr.msk.f32.gmra.mrb[12].mxu0 %vm60_vm0, %v1737_v35 }
 0x108   :  { %1338 = vmatprep.mubr.msk.f32.mxu0 %vm1545_vm2, %v1546_v8 }
 0x10b   :  { %1339 = vmatmul.mubr.msk.f32.gmra.mrb[14].mxu0 %vm60_vm0, %v165_v44 }
 0x10c   :  { %1341 = vmatprep.mubr.msk.f32.mxu0 %vm1545_vm2, %v1546_v8 }
 0x10f   :  { %1342 = vmatmul.mubr.msk.f32.gmra.mrb[16].mxu0 %vm60_vm0, %v170_v52 }
 0x110   :  { %1344 = vmatprep.mubr.msk.f32.mxu0 %vm1545_vm2, %v1546_v8 }
 0x113   :  { %1345 = vmatmul.mubr.msk.f32.gmra.mrb[18].mxu0 %vm60_vm0, %v175_v61 }
 0x114   :  { %1382 = vmatprep.mubr.msk.f32.mxu0 %vm1545_vm2, %v1546_v8 }
 0x179   :  { %v1797_v24 = vpop.xlane.xlu0 %437 }
 0x17a   :  { %v666_v25 = vmul.f32 %v482_v17, %v1797_v24 }
 0x17c   :  { %v672_v27 = vsel %vm671_vm3, %v666_v25, 0.0 }
 0x17d   :  { %v1800_v26 = vpop.xlane.xlu0 %440 }
 0x17e   :  { %v667_v28 = vmul.f32 %v483_v18, %v1800_v26 }
 0x180   :  { %v673_v29 = vsel %vm671_vm3, %v667_v28, 0.0 }
 0x181   :  { %v1805_v30 = vpop.xlane.xlu1 %443  ;;  %v674_v31 = vadd.f32 %v673_v29, %v672_v27  ;;  %v481_v29 = vld [vmem:[%s1981_s8] sm:$0x3] }
 0x182   :  { %v668_v32 = vmul.f32 %v484_v20, %v1805_v30 }
 0x184   :  { %v675_v33 = vsel %vm671_vm3, %v668_v32, 0.0 }
 0x185   :  { %v676_v34 = vadd.f32 %v675_v33, %v674_v31  ;;  %v1809_v35 = vpop.xlane.xlu1 %446 }
 0x186   :  { %v669_v36 = vmul.f32 %v485_v21, %v1809_v35 }
 0x188   :  { %v677_v37 = vsel %vm671_vm3, %v669_v36, 0.0 }
 0x189   :  { %v1813_v38 = vadd.f32 %v677_v37, %v676_v34 }
 0x1d6   :  { %v407_v43 = vpop.f32.mrb[10].mxu0 }
 0x1d7   :  { %v476_v44 = vmul.f32 %v471_v39, %v407_v43  ;;  %v1334_v45 = vpop.f32.mrb[11].mxu0  ;;  %v775_v4 = vmul.f32 %v770_v2, %v407_v43 }
 0x1d9   :  { %1358 = vmatmul.mubr.msk.f32.vlgmr.msra.gmra.mrb[10].mxu1 %vm487_vm4, %v476_v44 }
 0x1da   :  { %v412_v50 = vpop.f32.mrb[12].mxu0  ;;  %1360 = vmatprep.mubr.msk.f32.mxu1 %vm1545_vm2, %v1546_v8  ;;  %1474 = vmatpush3.bf16.msra.mxu1 %v1473_v42 }
 0x1db   :  { %v477_v51 = vmul.f32 %v472_v46, %v412_v50  ;;  %v1337_v52 = vpop.f32.mrb[13].mxu0  ;;  %1475 = vmatprep.subr.bf16.mxu1 %v1544_v3  ;;  %v776_v7 = vmul.f32 %v771_v6, %v412_v50  ;;  %v1485_v50 = vpack.c.bf16 %v1800_v26, %v1797_v24  ;;  %v1547_v24 = vmov 0  }
 0x1dc   :  { %v450_v52 = vpop.xlane.xlu0 %449  ;;  %1503 = vset.pattern.permute.xlu0 %v1547_v24 }
 0x1dd   :  { %1361 = vmatmul.mubr.msk.f32.gmra.mrb[12].mxu1 %vm487_vm4, %v477_v51  ;;  %v1488_v51 = vpack.c.bf16 %v1809_v35, %v1805_v30  ;;  %v670_v26 = vmul.f32 %v1787_v23, %v450_v52 }
 0x1de   :  { %v417_v54 = vpop.f32.mrb[14].mxu0  ;;  %1363 = vmatprep.mubr.msk.f32.mxu1 %vm1545_vm2, %v1546_v8  ;;  %1477 = vmatpush3.bf16.msra.mxu1 %v1476_v49  ;;  %v780_v49 = vld [vmem:[%s1984_s11] sm:$0xf] }
 0x1df   :  { %v478_v55 = vmul.f32 %v473_v53, %v417_v54  ;;  %v1340_v56 = vpop.f32.mrb[15].mxu0  ;;  %1393 = vmatprep.subr.mxu1 %v1546_v8  ;;  %v777_v10 = vmul.f32 %v772_v9, %v417_v54  ;;  %v679_v53 = vsel %vm671_vm3, %v670_v26, 0.0 }
 0x1e0   :  { %v680_v54 = vadd.f32 %v679_v53, %v1813_v38 }
 0x1e1   :  { %1364 = vmatmul.mubr.msk.f32.gmra.mrb[14].mxu1 %vm487_vm4, %v478_v55 }
 0x1e2   :  { %v422_v59 = vpop.f32.mrb[16].mxu0  ;;  %1366 = vmatprep.mubr.msk.f32.mxu1 %vm1545_vm2, %v1546_v8  ;;  %1394 = vmatpush3.msra.mxu1 %v1862_v58  ;;  %v681_v55 = vrot.slane %v680_v54, 4 }
 0x1e3   :  { %v479_v60 = vmul.f32 %v474_v57, %v422_v59  ;;  %v1343_v61 = vpop.f32.mrb[17].mxu0  ;;  %v778_v12 = vmul.f32 %v773_v11, %v422_v59 }
 0x1e5   :  { %1367 = vmatmul.mubr.msk.f32.gmra.mrb[16].mxu1 %vm487_vm4, %v479_v60 }
 0x1e6   :  { %v427_v63 = vpop.f32.mrb[18].mxu0  ;;  %1369 = vmatprep.mubr.msk.f32.mxu1 %vm1545_vm2, %v1546_v8 }
 0x1e7   :  { %v480_v0 = vmul.f32 %v475_v62, %v427_v63  ;;  %v1346_v1 = vpop.f32.mrb[19].mxu0  ;;  %v779_v5 = vmul.f32 %v774_v13, %v427_v63 }
 0x1e9   :  { %1370 = vmatmul.mubr.msk.f32.gmra.mrb[18].mxu1 %vm487_vm4, %v480_v0 }
 0x1ea   :  { %1395 = vmatprep.mubr.msk.f32.mxu1 %vm1545_vm2, %v1546_v8 }
 0x1ed   :  { %1396 = vmatmul.mubr.msk.f32.vlgmr.msra.gmra.mrb[20].mxu1 %vm487_vm4, %v775_v4 }
 0x1ee   :  { %1398 = vmatprep.mubr.msk.f32.mxu1 %vm1545_vm2, %v1546_v8 }
 0x1f1   :  { %1399 = vmatmul.mubr.msk.f32.gmra.mrb[22].mxu1 %vm487_vm4, %v776_v7 }
 0x1f2   :  { %1401 = vmatprep.mubr.msk.f32.mxu1 %vm1545_vm2, %v1546_v8 }
 0x1f5   :  { %1402 = vmatmul.mubr.msk.f32.gmra.mrb[24].mxu1 %vm487_vm4, %v777_v10 }
 0x1f6   :  { %1404 = vmatprep.mubr.msk.f32.mxu1 %vm1545_vm2, %v1546_v8 }
 0x1f9   :  { %1405 = vmatmul.mubr.msk.f32.gmra.mrb[26].mxu1 %vm487_vm4, %v778_v12 }
 0x1fa   :  { %1407 = vmatprep.mubr.msk.f32.mxu1 %vm1545_vm2, %v1546_v8 }
 0x1fd   :  { %1408 = vmatmul.mubr.msk.f32.gmra.mrb[28].mxu1 %vm487_vm4, %v779_v5 }
 0x2ac   :  { %v569_v14 = vpop.f32.mrb[10].mxu1 }
 0x2ad   :  { %v1359_v15 = vpop.f32.mrb[11].mxu1 }
 0x2b0   :  { %v574_v16 = vpop.f32.mrb[12].mxu1 }
 0x2b1   :  { %v1467_v17 = vpack.c.bf16 %v574_v16, %v569_v14  ;;  %v1362_v18 = vpop.f32.mrb[13].mxu1 }
 0x2b2   :  { %v461_v18 = vpop.xlane.xlu0 %460 }
 0x2b3   :  { %1468 = vmatpush3.bf16.msra.mxu0 %v1467_v17  ;;  %v458_v17 = vpop.xlane.xlu1 %457 }
 0x2b4   :  { %v579_v19 = vpop.f32.mrb[14].mxu1  ;;  %1469 = vmatprep.subr.bf16.mxu0 %v1544_v3 }
 0x2b5   :  { %v1365_v20 = vpop.f32.mrb[15].mxu1 }
 0x2b6   :  { %v1034_v20 = vmul.f32 %v1821_v40, %v458_v17 }
 0x2b8   :  { %v584_v21 = vpop.f32.mrb[16].mxu1 }
 0x2b9   :  { %v1470_v22 = vpack.c.bf16 %v584_v21, %v579_v19  ;;  %v1368_v25 = vpop.f32.mrb[17].mxu1  ;;  %v1035_v19 = vmul.f32 %v1826_v41, %v461_v18  ;;  %v464_v21 = vpop.xlane.xlu1 %463 }
 0x2ba   :  { %v467_v25 = vpop.xlane.xlu0 %466 }
 0x2bb   :  { %1471 = vmatpush3.bf16.msra.mxu0 %v1470_v22  ;;  %v1041_v22 = vsel %vm1039_vm10, %v1035_v19, 0.0 }
 0x2bc   :  { %v589_v27 = vpop.f32.mrb[18].mxu1  ;;  %1380 = vmatprep.subr.mxu0 %v1546_v8 }
 0x2bd   :  { %v1371_v28 = vpop.f32.mrb[19].mxu1 }
 0x2be   :  { %v1036_v28 = vmul.f32 %v1836_v47, %v464_v21 }
 0x2bf   :  { %1381 = vmatpush3.msra.mxu0 %v589_v27  ;;  %v1040_v27 = vsel %vm1039_vm10, %v1034_v20, 0.0 }
 0x2c0   :  { %1383 = vmatmul.mubr.msk.f32.vlgmr.msra.gmra.mrb[20].mxu0 %vm487_vm4, %v481_v29  ;;  %v867_v31 = vpop.f32.mrb[20].mxu1  ;;  %1478 = vmatprep.subr.bf16.mxu0 %v1544_v3  ;;  %v1042_v29 = vadd.f32 %v1041_v22, %v1040_v27 }
 0x2c1   :  { %v1397_v32 = vpop.f32.mrb[21].mxu1  ;;  %1420 = vmatprep.mubr.msk.f32.mxu0 %vm1545_vm2, %v1546_v8 }
 0x2c2   :  { %v1043_v32 = vsel %vm1039_vm10, %v1036_v28, 0.0 }
 0x2c4   :  { %v872_v33 = vpop.f32.mrb[22].mxu1 }
 0x2c5   :  { %v1479_v34 = vpack.c.bf16 %v872_v33, %v867_v31  ;;  %v1400_v36 = vpop.f32.mrb[23].mxu1  ;;  %v1037_v31 = vmul.f32 %v1841_v48, %v467_v25  ;;  %v470_v33 = vpop.xlane.xlu1 %469 }
 0x2c7   :  { %1480 = vmatpush3.bf16.msra.mxu0 %v1479_v34  ;;  %v1044_v34 = vadd.f32 %v1043_v32, %v1042_v29  ;;  %v1045_v36 = vsel %vm1039_vm10, %v1037_v31, 0.0 }
 0x2c8   :  { %v877_v37 = vpop.f32.mrb[24].mxu1  ;;  %1481 = vmatprep.subr.bf16.mxu0 %v1544_v3 }
 0x2c9   :  { %v1403_v39 = vpop.f32.mrb[25].mxu1 }
 0x2ca   :  { %v1046_v39 = vadd.f32 %v1045_v36, %v1044_v34 }
 0x2cc   :  { %v882_v42 = vpop.f32.mrb[26].mxu1 }
 0x2cd   :  { %v1482_v43 = vpack.c.bf16 %v882_v42, %v877_v37  ;;  %v1406_v44 = vpop.f32.mrb[27].mxu1  ;;  %v1038_v37 = vmul.f32 %v1862_v58, %v470_v33 }
 0x2cf   :  { %1483 = vmatpush3.bf16.msra.mxu0 %v1482_v43  ;;  %v1047_v41 = vsel %vm1039_vm10, %v1038_v37, 0.0 }
 0x2d0   :  { %v887_v45 = vpop.f32.mrb[28].mxu1  ;;  %1418 = vmatprep.subr.mxu0 %v1546_v8  ;;  %v1048_v42 = vadd.f32 %v1047_v41, %v1046_v39 }
 0x2d1   :  { %v1409_v46 = vpop.f32.mrb[29].mxu1 }
 0x2d2   :  { %v1049_v40 = vrot.slane %v1048_v42, 4 }
 0x2d3   :  { %1419 = vmatpush3.msra.mxu0 %v887_v45 }
 0x2d4   :  { %1484 = vmatprep.subr.bf16.mxu0 %v1544_v3  ;;  %1421 = vmatmul.mubr.msk.f32.vlgmr.msra.gmra.mrb[22].mxu0 %vm487_vm4, %v780_v49  ;;  %v1050_v43 = vadd.f32 %v1049_v40, %v1048_v42 }
 0x2d5   :  { %1486 = vmatpush3.bf16.msra.mxu0 %v1485_v50  ;;  %1433 = vmatprep.mubr.msk.f32.mxu0 %vm1545_vm2, %v1546_v8 }
 0x2d6   :  { %1487 = vmatprep.subr.bf16.mxu0 %v1544_v3  ;;  %v682_v3 = vadd.f32 %v681_v55, %v680_v54  ;;  %v1051_v44 = vrot.slane %v1050_v43, 2 }
 0x2d8   :  { %v683_v56 = vrot.slane %v682_v3, 2  ;;  %v1052_v45 = vadd.f32 %v1051_v44, %v1050_v43 }
 0x2d9   :  { %1489 = vmatpush3.bf16.msra.mxu0 %v1488_v51 }
 0x2da   :  { %1431 = vmatprep.subr.mxu0 %v1546_v8  ;;  %v684_v57 = vadd.f32 %v683_v56, %v682_v3  ;;  %v1053_v46 = vrot.slane %v1052_v45, 1 }
 0x2dc   :  { %v685_v30 = vrot.slane %v684_v57, 1 }
 0x2dd   :  { %1432 = vmatpush3.msra.mxu0 %v450_v52 }
 0x2de   :  { %1434 = vmatmul.mubr.msk.f32.vlgmr.msra.gmra.mrb[24].mxu0 %vm487_vm4, %v780_v49  ;;  %v686_v35 = vadd.f32 %v685_v30, %v684_v57  ;;  %v1054_v49 = vadd.f32 %v1053_v46, %v1052_v45 }
 0x2e0   :  { %1504 = vrsqrt.f32 %v686_v35  ;;  %vm689_vm5 = vcmp.eq.f32.partialorder %v686_v35, inf  ;;  %v692_v62 = vand.u32 2147483648, %v686_v35  ;;  %vm691_vm6 = vcmp.eq.f32.partialorder %v686_v35, 0.0 }
 0x2e1   :  { %vm1066_vm11 = vcmp.eq.f32.partialorder %v1054_v49, inf  ;;  %v1069_v51 = vand.u32 2147483648, %v1054_v49  ;;  %vm1068_vm12 = vcmp.eq.f32.partialorder %v1054_v49, 0.0 }
 0x2ea   :  { %v1505_v59 = vpop.eup %1504 }
 0x2eb   :  { %v688_v60 = vmul.f32 %v1505_v59, %v686_v35 }
 0x2ed   :  { %v690_v61 = vsel %vm689_vm5, %v686_v35, %v688_v60 }
 0x2ee   :  { %v693_v63 = vsel %vm691_vm6, %v692_v62, %v690_v61 }
 0x2ef   :  { %v694_v0 = vadd.f32 1e-08, %v693_v63  ;;  %v697_v63 = vlaneseq }
 0x2f1   :  { %1506 = vrcp.f32 %v694_v0  ;;  %v698_v0 = vshrl.u32 %v697_v63, 7 }
 0x2fb   :  { %v1507_v23 = vpop.eup %1506 }
 0x393   :  { %v662_v1 = vpop.f32.mrb[20].mxu0 }
 0x394   :  { %v696_v38 = vmul.f32 %v1507_v23, %v662_v1  ;;  %v1384_v2 = vpop.f32.mrb[21].mxu0  ;;  %v700_v23 = vand.u32 127, %v697_v63 }
 0x396   :  { %v705_v4 = vsel %vm704_vm7, %v696_v38, -inf  ;;  %vm701_vm14 = vcmp.eq.s32.totalorder %v698_v0, %v700_v23 }
 0x397   :  { %706 = vmax.xlane.f32.xlu1 %v705_v4 }
 0x3a7   :  { %v960_v6 = vpop.f32.mrb[22].mxu0 }
 0x3a8   :  { %v1422_v7 = vpop.f32.mrb[23].mxu0 }
 0x3b1   :  { %v1030_v9 = vpop.f32.mrb[24].mxu0 }
 0x3b2   :  { %1508 = vrsqrt.f32 %v1030_v9  ;;  %v1435_v10 = vpop.f32.mrb[25].mxu0  ;;  %vm1057_vm8 = vcmp.eq.f32.partialorder %v1030_v9, inf  ;;  %v1060_v13 = vand.u32 2147483648, %v1030_v9  ;;  %vm1059_vm9 = vcmp.eq.f32.partialorder %v1030_v9, 0.0 }
 0x3bc   :  { %v1509_v11 = vpop.eup %1508 }
 0x3bd   :  { %v1056_v12 = vmul.f32 %v1509_v11, %v1030_v9 }
 0x3bf   :  { %v1058_v5 = vsel %vm1057_vm8, %v1030_v9, %v1056_v12 }
 0x3c0   :  { %v1061_v14 = vsel %vm1059_vm9, %v1060_v13, %v1058_v5 }
 0x3c1   :  { %v1062_v15 = vadd.f32 1e-08, %v1061_v14 }
 0x3c3   :  { %1510 = vrcp.f32 %v1062_v15 }
 0x3c4   :  { %1512 = vrsqrt.f32 %v1054_v49 }
 0x3cd   :  { %v1511_v16 = vpop.eup %1510 }
 0x3ce   :  { %1075 = vperm.xlu0 %1503, %v1511_v16   ;;  %v1513_v47 = vpop.eup %1512 }
 0x3cf   :  { %v1065_v50 = vmul.f32 %v1513_v47, %v1054_v49 }
 0x3d1   :  { %v1067_v48 = vsel %vm1066_vm11, %v1054_v49, %v1065_v50 }
 0x3d2   :  { %v1070_v24 = vsel %vm1068_vm12, %v1069_v51, %v1067_v48 }
 0x3d3   :  { %v1071_v58 = vadd.f32 1e-08, %v1070_v24 }
 0x3d5   :  { %1514 = vrcp.f32 %v1071_v58 }
 0x3df   :  { %v1515_v3 = vpop.eup %1514 }
 0x424   :  { %v707_v52 = vpop.xlane.xlu1 %706 }
 0x425   :  { %v708_v26 = vsub.f32 %v696_v38, %v707_v52 }
 0x427   :  { %v709_v53 = vmul.f32 1.442695, %v708_v26 }
 0x429   :  { %1516 = vpow2.f32 %v709_v53 }
 0x433   :  { %v1517_v30 = vpop.eup %1516 }
 0x434   :  { %v711_v35 = vsel %vm704_vm7, %v1517_v30, 0.0 }
 0x44d   :  { %v1076_v54 = vpop.permute.xlu0 %1075 }
 0x44e   :  { %v1078_v55 = vmul.f32 %v1076_v54, %v960_v6  ;;  %v1943_v6 = vsel %vm701_vm14, 1.0, %v1546_v8 }
 0x450   :  { %v1079_v56 = vmul.f32 %v1515_v3, %v1078_v55 }
 0x452   :  { %v1081_v57 = vsel %vm1080_vm13, %v1079_v56, -inf }
 0x453   :  { %1082 = vmax.xlane.f32.xlu1 %v1081_v57 }
 0x457   :  { %712 = vadd.xlane.f32.xlu1 %v711_v35 }
 0x4e0   :  { %v1083_v59 = vpop.xlane.xlu1 %1082 }
 0x4e1   :  { %v1084_v60 = vsub.f32 %v1079_v56, %v1083_v59 }
 0x4e3   :  { %v1085_v61 = vmul.f32 1.442695, %v1084_v60 }
 0x4e4   :  { %v713_v62 = vpop.xlane.xlu1 %712 }
 0x4e5   :  { %1518 = vpow2.f32 %v1085_v61 }
 0x4e6   :  { %1520 = vlog2.f32 %v713_v62 }
 0x4ef   :  { %v1519_v1 = vpop.eup %1518 }
 0x4f0   :  { %v1521_v38 = vpop.eup %1520  ;;  %v1087_v2 = vsel %vm1080_vm13, %v1519_v1, 0.0 }
 0x4f1   :  { %v715_v4 = vmul.f32 0.6931472, %v1521_v38  ;;  %1088 = vadd.xlane.f32.xlu1 %v1087_v2 }
 0x4f3   :  { %v716_v7 = vsub.f32 %v708_v26, %v715_v4 }
 0x4f5   :  { %v732_v9 = vsel %vm704_vm7, %v716_v7, -inf  ;;  %769 = vst.msk [vmem:[%s1985_s12] sm:$0x3] %vm704_vm7, %v716_v7  ;;  %v717_v10 = vmul.f32 %v1943_v6, %v716_v7 }
 0x4f6   :  { %v733_v11 = vrot.slane %v732_v9, 4 }
 0x4f7   :  { %v718_v12 = vsel %vm704_vm7, %v717_v10, 0.0 }
 0x4f8   :  { %719 = vadd.xlane.f32.xlu1 %v718_v12  ;;  %v734_v13 = vmax.f32 %v732_v9, %v733_v11 }
 0x4fa   :  { %v735_v5 = vrot.slane %v734_v13, 2 }
 0x4fc   :  { %v736_v14 = vmax.f32 %v734_v13, %v735_v5 }
 0x4fe   :  { %v737_v15 = vrot.slane %v736_v14, 1 }
 0x500   :  { %v738_v8 = vmax.f32 %v736_v14, %v737_v15 }
 0x502   :  { %v739_v16 = vsub.f32 %v716_v7, %v738_v8 }
 0x504   :  { %v740_v17 = vmul.f32 1.442695, %v739_v16 }
 0x506   :  { %1522 = vpow2.f32 %v740_v17 }
 0x510   :  { %v1523_v18 = vpop.eup %1522 }
 0x511   :  { %v742_v19 = vsel %vm704_vm7, %v1523_v18, 0.0 }
 0x512   :  { %v743_v20 = vrot.slane %v742_v19, 4 }
 0x514   :  { %v744_v21 = vadd.f32 %v743_v20, %v742_v19 }
 0x516   :  { %v745_v22 = vrot.slane %v744_v21, 2 }
 0x518   :  { %v746_v25 = vadd.f32 %v745_v22, %v744_v21 }
 0x51a   :  { %v747_v27 = vrot.slane %v746_v25, 1 }
 0x51c   :  { %v748_v28 = vadd.f32 %v747_v27, %v746_v25 }
 0x51e   :  { %1524 = vlog2.f32 %v748_v28 }
 0x528   :  { %v1525_v29 = vpop.eup %1524 }
 0x529   :  { %v750_v31 = vmul.f32 0.6931472, %v1525_v29 }
 0x52b   :  { %v751_v32 = vsub.f32 %v739_v16, %v750_v31 }
 0x52d   :  { %v752_v33 = vmul.f32 %v1943_v6, %v751_v32 }
 0x52f   :  { %v753_v34 = vsel %vm704_vm7, %v752_v33, 0.0 }
 0x530   :  { %754 = vadd.xlane.f32.xlu1 %v753_v34 }
 0x57e   :  { %v1089_v36 = vpop.xlane.xlu1 %1088 }
 0x57f   :  { %1526 = vlog2.f32 %v1089_v36 }
 0x585   :  { %v720_v37 = vpop.xlane.xlu1 %719 }
 0x586   :  { %v721_v39 = vrot.slane %v720_v37, 4 }
 0x588   :  { %v722_v41 = vadd.f32 %v721_v39, %v720_v37 }
 0x589   :  { %v1527_v42 = vpop.eup %1526 }
 0x58a   :  { %v1091_v40 = vmul.f32 0.6931472, %v1527_v42  ;;  %v723_v43 = vrot.slane %v722_v41, 2 }
 0x58c   :  { %v1092_v44 = vsub.f32 %v1084_v60, %v1091_v40  ;;  %v724_v45 = vadd.f32 %v723_v43, %v722_v41 }
 0x58e   :  { %v1108_v46 = vsel %vm1080_vm13, %v1092_v44, -inf  ;;  %v1093_v49 = vmul.f32 %v1943_v6, %v1092_v44  ;;  %v725_v47 = vrot.slane %v724_v45, 1 }
 0x58f   :  { %v1109_v50 = vrot.slane %v1108_v46, 4 }
 0x590   :  { %v1094_v48 = vsel %vm1080_vm13, %v1093_v49, 0.0  ;;  %v726_v51 = vadd.f32 %v725_v47, %v724_v45 }
 0x591   :  { %v1110_v52 = vmax.f32 %v1108_v46, %v1109_v50  ;;  %1095 = vadd.xlane.f32.xlu1 %v1094_v48 }
 0x592   :  { %1490 = vpush %v726_v51 }
 0x593   :  { %v1111_v24 = vrot.slane %v1110_v52, 2 }
 0x595   :  { %v1112_v26 = vmax.f32 %v1110_v52, %v1111_v24 }
 0x597   :  { %v1113_v58 = vrot.slane %v1112_v26, 1 }
 0x599   :  { %v1114_v53 = vmax.f32 %v1112_v26, %v1113_v58 }
 0x59b   :  { %v1115_v54 = vsub.f32 %v1092_v44, %v1114_v53 }
 0x59d   :  { %v1116_v55 = vmul.f32 1.442695, %v1115_v54 }
 0x59f   :  { %1528 = vpow2.f32 %v1116_v55 }
 0x5a9   :  { %v1529_v3 = vpop.eup %1528 }
 0x5aa   :  { %v1118_v56 = vsel %vm1080_vm13, %v1529_v3, 0.0 }
 0x5ab   :  { %v1119_v57 = vrot.slane %v1118_v56, 4 }
 0x5ad   :  { %v1120_v30 = vadd.f32 %v1119_v57, %v1118_v56 }
 0x5af   :  { %v1121_v35 = vrot.slane %v1120_v30, 2 }
 0x5b1   :  { %v1122_v59 = vadd.f32 %v1121_v35, %v1120_v30 }
 0x5b3   :  { %v1123_v60 = vrot.slane %v1122_v59, 1 }
 0x5b5   :  { %v1124_v61 = vadd.f32 %v1123_v60, %v1122_v59 }
 0x5b7   :  { %1530 = vlog2.f32 %v1124_v61 }
 0x5bd   :  { %v755_v62 = vpop.xlane.xlu1 %754 }
 0x5be   :  { %v756_v63 = vrot.slane %v755_v62, 4 }
 0x5c0   :  { %v757_v0 = vadd.f32 %v756_v63, %v755_v62 }
 0x5c1   :  { %v1531_v23 = vpop.eup %1530 }
 0x5c2   :  { %v758_v1 = vrot.slane %v757_v0, 2  ;;  %v1126_v38 = vmul.f32 0.6931472, %v1531_v23 }
 0x5c3   :  { %s1491_s12 = spop %1490 }
 0x5c4   :  { %v1127_v2 = vsub.f32 %v1115_v54, %v1126_v38  ;;  %v759_v4 = vadd.f32 %v758_v1, %v757_v0  ;;  %s728_s2 = ssub.f32 0.0, %s1491_s12 }
 0x5c6   :  { %v1128_v7 = vmul.f32 %v1943_v6, %v1127_v2  ;;  %v760_v9 = vrot.slane %v759_v4, 1  ;;  %s731_s25 = smul.f32 0.5, %s728_s2 }
 0x5c8   :  { %v1129_v10 = vsel %vm1080_vm13, %v1128_v7, 0.0  ;;  %v761_v11 = vadd.f32 %v760_v9, %v759_v4 }
 0x5c9   :  { %1130 = vadd.xlane.f32.xlu1 %v1129_v10 }
 0x5ca   :  { %1492 = vpush %v761_v11 }
 0x5fb   :  { %s1493_s22 = spop %1492 }
 0x5fc   :  { %s763_s23 = ssub.f32 0.0, %s1493_s22 }
 0x5fe   :  { %s766_s24 = smul.f32 0.5, %s763_s23 }
 0x600   :  { %s767_s1 = sadd.f32 %s766_s24, %s731_s25 }
 0x602   :  { %s768_s26 = smul.f32 0.5, %s767_s1 }
 0x604   :  { %s1145_s29 = smul.f32 0.1, %s768_s26 }
 0x61e   :  { %v1096_v12 = vpop.xlane.xlu1 %1095 }
 0x61f   :  { %v1097_v13 = vrot.slane %v1096_v12, 4 }
 0x621   :  { %v1098_v5 = vadd.f32 %v1097_v13, %v1096_v12 }
 0x623   :  { %v1099_v14 = vrot.slane %v1098_v5, 2 }
 0x625   :  { %v1100_v15 = vadd.f32 %v1099_v14, %v1098_v5 }
 0x627   :  { %v1101_v8 = vrot.slane %v1100_v15, 1 }
 0x629   :  { %v1102_v16 = vadd.f32 %v1101_v8, %v1100_v15 }
 0x62b   :  { %1494 = vpush %v1102_v16 }
 0x656   :  { %v1131_v17 = vpop.xlane.xlu1 %1130 }
 0x657   :  { %v1132_v18 = vrot.slane %v1131_v17, 4 }
 0x659   :  { %v1133_v19 = vadd.f32 %v1132_v18, %v1131_v17 }
 0x65b   :  { %v1134_v20 = vrot.slane %v1133_v19, 2 }
 0x65c   :  { %s1495_s0 = spop %1494 }
 0x65d   :  { %v1135_v21 = vadd.f32 %v1134_v20, %v1133_v19  ;;  %s1104_s3 = ssub.f32 0.0, %s1495_s0 }
 0x65f   :  { %v1136_v6 = vrot.slane %v1135_v21, 1  ;;  %s1107_s27 = smul.f32 0.25, %s1104_s3 }
 0x661   :  { %v1137_v22 = vadd.f32 %v1136_v6, %v1135_v21 }
 0x663   :  { %1496 = vpush %v1137_v22 }
 0x694   :  { %s1497_s5 = spop %1496 }
 0x695   :  { %s1139_s4 = ssub.f32 0.0, %s1497_s5 }
 0x697   :  { %s1142_s28 = smul.f32 0.25, %s1139_s4 }
 0x699   :  { %s1143_s10 = sadd.f32 %s1142_s28, %s1107_s27 }
 0x69b   :  { %s1144_s30 = smul.f32 0.5, %s1143_s10 }
 0x69d   :  { %s1146_s6 = sadd.f32 %s1145_s29, %s1144_s30 }
 0x69f   :  { %1148 = sst [smem:[#allocation2]] %s1146_s6 }
 0x6a0   :  { %1541 = shalt.err (!%p1538_p2)
}
 0x6a1   :  { %s1548_s19 = smov [#allocation2]  }
 0x6a2   :  { %1158 = dma.smem_to_hbm %s1548_s19, 16, %s1986_s13, [#allocation3]  }
 0x6a3   :  { %1542 = dma.done.wait [#allocation3], 16  }
 0x6a4   :  { %1543 = vsyncadd [#allocation3], 4294967280 }
 0x6a5   :  { %1164 = sfence }
 0x6a6   :  { %1165 = vsyncpa [#allocation3], 1 }

</bundles_post_ra>
